<compile_context>
chip_gen: v5e
topology: v5e:2x2
jax: 0.10.0
libtpu: 0.0.40
codegen_flags: <defaults>
</compile_context>

<pallas_src>
import functools

import jax
import jax.numpy as jnp
from jax.experimental import pallas as pl
from jax.experimental.pallas import tpu as pltpu


def _round_up(x: int, m: int) -> int:
    return ((x + m - 1) // m) * m


def _encoder_kernel(x_ref, w_ref, b_ref, o_ref):
    """One batch-tile grid point.

    x_ref: (window_size, TB, state_size)  raw input tile (permute fused here)
    w_ref: (window_size, state_size, C_pad)  pre-transposed conv weight
    b_ref: (1, C_pad)                        bias (broadcast over rows)
    o_ref: (TB, C_pad)                       lane-dense output tile
    """
    window_size = x_ref.shape[0]

    # Statically unrolled reduction over the window axis: W tiny MXU dots,
    # accumulated in f32 vregs.  K = state_size per dot.
    acc = jnp.dot(x_ref[0], w_ref[0], preferred_element_type=jnp.float32)
    for w in range(1, window_size):
        acc += jnp.dot(x_ref[w], w_ref[w], preferred_element_type=jnp.float32)

    o_ref[...] = (acc + b_ref[...]).astype(o_ref.dtype)


def prepare_encoder_params(weight, bias, compute_dtype=jnp.float32):
    """One-time parameter prep (do NOT call per forward step).

    weight: (num_classes, 1, window_size, state_size)  -- Conv2d weight
    bias:   (num_classes,)
    Returns:
      w_prepped: (window_size, state_size, C_pad)  compute_dtype
      b_prepped: (1, C_pad)                        float32
    """
    num_classes = weight.shape[0]
    c_pad = _round_up(max(num_classes, 1), 128)  # lane-dense; never below 128
    # (C, 1, W, S) -> (W, S, C), zero-pad C to C_pad.
    w = jnp.transpose(weight[:, 0, :, :], (1, 2, 0))
    w = jnp.pad(w, ((0, 0), (0, 0), (0, c_pad - num_classes)))
    b = jnp.pad(bias, (0, c_pad - num_classes)).reshape(1, c_pad)
    return w.astype(compute_dtype), b.astype(jnp.float32)


@functools.partial(jax.jit, static_argnames=("num_classes", "block_b"))
def encoder_forward(x, w_prepped, b_prepped, *, num_classes, block_b=512):
    """Pallas equivalent of Encoder.forward.

    x:          (window_size, batch, state_size)  -- same layout PyTorch gets
    w_prepped:  (window_size, state_size, C_pad)  from prepare_encoder_params
    b_prepped:  (1, C_pad)
    Returns (batch, num_classes) float32.
    # TODO(synk): PyTorch's squeeze() collapses differently when batch == 1 or
    # num_classes == 1; this always returns (batch, num_classes).
    """
    window_size, batch, state_size = x.shape
    c_pad = w_prepped.shape[-1]
    compute_dtype = w_prepped.dtype

    # Batch tile: multiple of 8 sublanes, capped at block_b (sweepable).
    block_b = max(8, _round_up(block_b, 8))
    tb = min(block_b, _round_up(batch, 8))
    b_pad = _round_up(batch, tb)

    x_p = x.astype(compute_dtype)
    if b_pad != batch:
        x_p = jnp.pad(x_p, ((0, 0), (0, b_pad - batch), (0, 0)))

    grid = (b_pad // tb,)  # only independent batch tiles -> fully parallel

    out = pl.pallas_call(
        _encoder_kernel,
        out_shape=jax.ShapeDtypeStruct((b_pad, c_pad), jnp.float32),
        grid_spec=pltpu.PrefetchScalarGridSpec(
            num_scalar_prefetch=0,
            grid=grid,
            in_specs=[
                # Full window + full state per batch tile, one DMA per tile;
                # the PyTorch permute is fused via the layout read here.
                pl.BlockSpec(
                    (window_size, tb, state_size), lambda b: (0, b, 0)
                ),
                # Entire (tiny) pre-transposed weight, resident in VMEM.
                pl.BlockSpec(
                    (window_size, state_size, c_pad), lambda b: (0, 0, 0)
                ),
                pl.BlockSpec((1, c_pad), lambda b: (0, 0)),
            ],
            out_specs=pl.BlockSpec((tb, c_pad), lambda b: (b, 0)),
        ),
        compiler_params=pltpu.CompilerParams(
            dimension_semantics=("parallel",),
        ),
    )(x_p, w_prepped, b_prepped)

    return out[:batch, :num_classes]


if __name__ == "__main__":
    # Small, module-consistent shapes: OHLC -> state_size=4.
    window_size = 8
    state_size = 4
    num_classes = 3
    batch = 4

    key = jax.random.PRNGKey(0)
    kx, kw, kb = jax.random.split(key, 3)

    # Input exactly as Encoder.forward expects: (window_size, batch, state_size).
    x = jax.random.normal(kx, (window_size, batch, state_size), dtype=jnp.float32)
    # Conv2d params: (out_ch=num_classes, in_ch=1, kH=window_size, kW=state_size).
    weight = (
        jax.random.normal(
            kw, (num_classes, 1, window_size, state_size), dtype=jnp.float32
        )
        * 0.1
    )
    bias = jax.random.normal(kb, (num_classes,), dtype=jnp.float32) * 0.1

    # Params are flattened / padded once, outside the per-step call path.
    w_prepped, b_prepped = prepare_encoder_params(weight, bias)

    out = encoder_forward(x, w_prepped, b_prepped, num_classes=num_classes)
    out = jax.block_until_ready(out)

    # Reference (plain JAX): full-extent conv == dense layer.
    x_nchw = jnp.transpose(x, (1, 0, 2))[:, None, :, :]  # (B, 1, H, W)
    ref = jnp.einsum("bchw,ochw->bo", x_nchw, weight) + bias[None, :]

    assert out.shape == (batch, num_classes), out.shape
    assert jnp.allclose(out, ref, atol=1e-5, rtol=1e-5), "mismatch vs reference"

    print("KERNEL_OK")
</pallas_src>

<mosaic_0001>
module attributes {stable_mosaic.version = 11 : i64} {
  func.func @_encoder_kernel(%arg0: i32, %arg1: memref<8x8x4xf32, #tpu.memory_space<vmem>>, %arg2: memref<8x4x128xf32, #tpu.memory_space<vmem>>, %arg3: memref<1x128xf32, #tpu.memory_space<vmem>>, %arg4: memref<8x128xf32, #tpu.memory_space<vmem>>) attributes {dimension_semantics = [#tpu.dimension_semantics<parallel>], iteration_bounds = array<i64: 1>, scalar_prefetch = 0 : i64, scratch_operands = 0 : i64, tpu.core_type = #tpu.core_type<tc>, window_params = [{transform_indices = @transform_0, window_bounds = array<i64: 8, 8, 4>}, {pipeline_mode = #tpu.pipeline_mode<synchronous>, transform_indices = @transform_1, window_bounds = array<i64: 8, 4, 128>}, {pipeline_mode = #tpu.pipeline_mode<synchronous>, transform_indices = @transform_2, window_bounds = array<i64: 1, 128>}, {transform_indices = @transform_3, window_bounds = array<i64: 8, 128>}]} {
    %c0 = arith.constant 0 : index
    %c0_0 = arith.constant 0 : index
    %c0_1 = arith.constant 0 : index
    %0 = vector.load %arg1[%c0, %c0_0, %c0_1] : memref<8x8x4xf32, #tpu.memory_space<vmem>>, vector<1x8x4xf32>
    %1 = vector.shape_cast %0 : vector<1x8x4xf32> to vector<8x4xf32>
    %c0_2 = arith.constant 0 : index
    %c0_3 = arith.constant 0 : index
    %c0_4 = arith.constant 0 : index
    %2 = vector.load %arg2[%c0_2, %c0_3, %c0_4] : memref<8x4x128xf32, #tpu.memory_space<vmem>>, vector<1x4x128xf32>
    %3 = vector.shape_cast %2 : vector<1x4x128xf32> to vector<4x128xf32>
    %cst = arith.constant dense<0.000000e+00> : vector<8x128xf32>
    %4 = tpu.matmul %1, %3, %cst {dimension_numbers = #tpu.dot_dimension_numbers<[1], [0], [0], [1], [0, 0, 1, 1], [], []>} : vector<8x4xf32>, vector<4x128xf32>, vector<8x128xf32> -> vector<8x128xf32>
    %c1 = arith.constant 1 : index
    %c0_5 = arith.constant 0 : index
    %c0_6 = arith.constant 0 : index
    %5 = vector.load %arg1[%c1, %c0_5, %c0_6] : memref<8x8x4xf32, #tpu.memory_space<vmem>>, vector<1x8x4xf32>
    %6 = vector.shape_cast %5 : vector<1x8x4xf32> to vector<8x4xf32>
    %c1_7 = arith.constant 1 : index
    %c0_8 = arith.constant 0 : index
    %c0_9 = arith.constant 0 : index
    %7 = vector.load %arg2[%c1_7, %c0_8, %c0_9] : memref<8x4x128xf32, #tpu.memory_space<vmem>>, vector<1x4x128xf32>
    %8 = vector.shape_cast %7 : vector<1x4x128xf32> to vector<4x128xf32>
    %cst_10 = arith.constant dense<0.000000e+00> : vector<8x128xf32>
    %9 = tpu.matmul %6, %8, %cst_10 {dimension_numbers = #tpu.dot_dimension_numbers<[1], [0], [0], [1], [0, 0, 1, 1], [], []>} : vector<8x4xf32>, vector<4x128xf32>, vector<8x128xf32> -> vector<8x128xf32>
    %10 = arith.addf %4, %9 : vector<8x128xf32>
    %c2 = arith.constant 2 : index
    %c0_11 = arith.constant 0 : index
    %c0_12 = arith.constant 0 : index
    %11 = vector.load %arg1[%c2, %c0_11, %c0_12] : memref<8x8x4xf32, #tpu.memory_space<vmem>>, vector<1x8x4xf32>
    %12 = vector.shape_cast %11 : vector<1x8x4xf32> to vector<8x4xf32>
    %c2_13 = arith.constant 2 : index
    %c0_14 = arith.constant 0 : index
    %c0_15 = arith.constant 0 : index
    %13 = vector.load %arg2[%c2_13, %c0_14, %c0_15] : memref<8x4x128xf32, #tpu.memory_space<vmem>>, vector<1x4x128xf32>
    %14 = vector.shape_cast %13 : vector<1x4x128xf32> to vector<4x128xf32>
    %cst_16 = arith.constant dense<0.000000e+00> : vector<8x128xf32>
    %15 = tpu.matmul %12, %14, %cst_16 {dimension_numbers = #tpu.dot_dimension_numbers<[1], [0], [0], [1], [0, 0, 1, 1], [], []>} : vector<8x4xf32>, vector<4x128xf32>, vector<8x128xf32> -> vector<8x128xf32>
    %16 = arith.addf %10, %15 : vector<8x128xf32>
    %c3 = arith.constant 3 : index
    %c0_17 = arith.constant 0 : index
    %c0_18 = arith.constant 0 : index
    %17 = vector.load %arg1[%c3, %c0_17, %c0_18] : memref<8x8x4xf32, #tpu.memory_space<vmem>>, vector<1x8x4xf32>
    %18 = vector.shape_cast %17 : vector<1x8x4xf32> to vector<8x4xf32>
    %c3_19 = arith.constant 3 : index
    %c0_20 = arith.constant 0 : index
    %c0_21 = arith.constant 0 : index
    %19 = vector.load %arg2[%c3_19, %c0_20, %c0_21] : memref<8x4x128xf32, #tpu.memory_space<vmem>>, vector<1x4x128xf32>
    %20 = vector.shape_cast %19 : vector<1x4x128xf32> to vector<4x128xf32>
    %cst_22 = arith.constant dense<0.000000e+00> : vector<8x128xf32>
    %21 = tpu.matmul %18, %20, %cst_22 {dimension_numbers = #tpu.dot_dimension_numbers<[1], [0], [0], [1], [0, 0, 1, 1], [], []>} : vector<8x4xf32>, vector<4x128xf32>, vector<8x128xf32> -> vector<8x128xf32>
    %22 = arith.addf %16, %21 : vector<8x128xf32>
    %c4 = arith.constant 4 : index
    %c0_23 = arith.constant 0 : index
    %c0_24 = arith.constant 0 : index
    %23 = vector.load %arg1[%c4, %c0_23, %c0_24] : memref<8x8x4xf32, #tpu.memory_space<vmem>>, vector<1x8x4xf32>
    %24 = vector.shape_cast %23 : vector<1x8x4xf32> to vector<8x4xf32>
    %c4_25 = arith.constant 4 : index
    %c0_26 = arith.constant 0 : index
    %c0_27 = arith.constant 0 : index
    %25 = vector.load %arg2[%c4_25, %c0_26, %c0_27] : memref<8x4x128xf32, #tpu.memory_space<vmem>>, vector<1x4x128xf32>
    %26 = vector.shape_cast %25 : vector<1x4x128xf32> to vector<4x128xf32>
    %cst_28 = arith.constant dense<0.000000e+00> : vector<8x128xf32>
    %27 = tpu.matmul %24, %26, %cst_28 {dimension_numbers = #tpu.dot_dimension_numbers<[1], [0], [0], [1], [0, 0, 1, 1], [], []>} : vector<8x4xf32>, vector<4x128xf32>, vector<8x128xf32> -> vector<8x128xf32>
    %28 = arith.addf %22, %27 : vector<8x128xf32>
    %c5 = arith.constant 5 : index
    %c0_29 = arith.constant 0 : index
    %c0_30 = arith.constant 0 : index
    %29 = vector.load %arg1[%c5, %c0_29, %c0_30] : memref<8x8x4xf32, #tpu.memory_space<vmem>>, vector<1x8x4xf32>
    %30 = vector.shape_cast %29 : vector<1x8x4xf32> to vector<8x4xf32>
    %c5_31 = arith.constant 5 : index
    %c0_32 = arith.constant 0 : index
    %c0_33 = arith.constant 0 : index
    %31 = vector.load %arg2[%c5_31, %c0_32, %c0_33] : memref<8x4x128xf32, #tpu.memory_space<vmem>>, vector<1x4x128xf32>
    %32 = vector.shape_cast %31 : vector<1x4x128xf32> to vector<4x128xf32>
    %cst_34 = arith.constant dense<0.000000e+00> : vector<8x128xf32>
    %33 = tpu.matmul %30, %32, %cst_34 {dimension_numbers = #tpu.dot_dimension_numbers<[1], [0], [0], [1], [0, 0, 1, 1], [], []>} : vector<8x4xf32>, vector<4x128xf32>, vector<8x128xf32> -> vector<8x128xf32>
    %34 = arith.addf %28, %33 : vector<8x128xf32>
    %c6 = arith.constant 6 : index
    %c0_35 = arith.constant 0 : index
    %c0_36 = arith.constant 0 : index
    %35 = vector.load %arg1[%c6, %c0_35, %c0_36] : memref<8x8x4xf32, #tpu.memory_space<vmem>>, vector<1x8x4xf32>
    %36 = vector.shape_cast %35 : vector<1x8x4xf32> to vector<8x4xf32>
    %c6_37 = arith.constant 6 : index
    %c0_38 = arith.constant 0 : index
    %c0_39 = arith.constant 0 : index
    %37 = vector.load %arg2[%c6_37, %c0_38, %c0_39] : memref<8x4x128xf32, #tpu.memory_space<vmem>>, vector<1x4x128xf32>
    %38 = vector.shape_cast %37 : vector<1x4x128xf32> to vector<4x128xf32>
    %cst_40 = arith.constant dense<0.000000e+00> : vector<8x128xf32>
    %39 = tpu.matmul %36, %38, %cst_40 {dimension_numbers = #tpu.dot_dimension_numbers<[1], [0], [0], [1], [0, 0, 1, 1], [], []>} : vector<8x4xf32>, vector<4x128xf32>, vector<8x128xf32> -> vector<8x128xf32>
    %40 = arith.addf %34, %39 : vector<8x128xf32>
    %c7 = arith.constant 7 : index
    %c0_41 = arith.constant 0 : index
    %c0_42 = arith.constant 0 : index
    %41 = vector.load %arg1[%c7, %c0_41, %c0_42] : memref<8x8x4xf32, #tpu.memory_space<vmem>>, vector<1x8x4xf32>
    %42 = vector.shape_cast %41 : vector<1x8x4xf32> to vector<8x4xf32>
    %c7_43 = arith.constant 7 : index
    %c0_44 = arith.constant 0 : index
    %c0_45 = arith.constant 0 : index
    %43 = vector.load %arg2[%c7_43, %c0_44, %c0_45] : memref<8x4x128xf32, #tpu.memory_space<vmem>>, vector<1x4x128xf32>
    %44 = vector.shape_cast %43 : vector<1x4x128xf32> to vector<4x128xf32>
    %cst_46 = arith.constant dense<0.000000e+00> : vector<8x128xf32>
    %45 = tpu.matmul %42, %44, %cst_46 {dimension_numbers = #tpu.dot_dimension_numbers<[1], [0], [0], [1], [0, 0, 1, 1], [], []>} : vector<8x4xf32>, vector<4x128xf32>, vector<8x128xf32> -> vector<8x128xf32>
    %46 = arith.addf %40, %45 : vector<8x128xf32>
    %c0_47 = arith.constant 0 : index
    %c0_48 = arith.constant 0 : index
    %47 = vector.load %arg3[%c0_47, %c0_48] : memref<1x128xf32, #tpu.memory_space<vmem>>, vector<1x128xf32>
    %48 = vector.broadcast %47 : vector<1x128xf32> to vector<8x128xf32>
    %49 = arith.addf %46, %48 : vector<8x128xf32>
    %c0_49 = arith.constant 0 : index
    %c0_50 = arith.constant 0 : index
    %50 = vector.load %arg4[%c0_49, %c0_50] : memref<8x128xf32, #tpu.memory_space<vmem>>, vector<8x128xf32>
    tpu.vector_store %arg4[%c0_49, %c0_50], %49 {strides = array<i32>} : memref<8x128xf32, #tpu.memory_space<vmem>>, vector<8x128xf32>,
    return
  }
  func.func @transform_0(%arg0: i32) -> (i32, i32, i32) {
    %c0_i32 = arith.constant 0 : i32
    %c0_i32_0 = arith.constant 0 : i32
    %c0_i32_1 = arith.constant 0 : i32
    return %c0_i32, %arg0, %c0_i32_0 : i32, i32, i32
  }
  func.func @transform_1(%arg0: i32) -> (i32, i32, i32) {
    %c0_i32 = arith.constant 0 : i32
    %c0_i32_0 = arith.constant 0 : i32
    %c0_i32_1 = arith.constant 0 : i32
    %c0_i32_2 = arith.constant 0 : i32
    return %c0_i32, %c0_i32_0, %c0_i32_1 : i32, i32, i32
  }
  func.func @transform_2(%arg0: i32) -> (i32, i32) {
    %c0_i32 = arith.constant 0 : i32
    %c0_i32_0 = arith.constant 0 : i32
    %c0_i32_1 = arith.constant 0 : i32
    return %c0_i32, %c0_i32_0 : i32, i32
  }
  func.func @transform_3(%arg0: i32) -> (i32, i32) {
    %c0_i32 = arith.constant 0 : i32
    %c0_i32_0 = arith.constant 0 : i32
    return %arg0, %c0_i32 : i32, i32
  }
}

</mosaic_0001>

<bundles_post_ra>
// kernel: encoder_forward.1
= control target key start
LH: loop header
LB: loop body
LE: loop exit
PB: predicated region body
PF: predicated region fallthrough
CT: control target
= control target key end

     0   :  { %vm24_vm0 = vcmask 1043456   ;;  %vm20_vm1 = vcmask 31744   ;;  %s391_s1 = inlined_call_operand.vmem [shape: f32[8,4,128], index: 1, kind: input, shape index: {}]   ;;  %s392_s0 = inlined_call_operand.vmem [shape: f32[8,8,4], index: 0, kind: input, shape index: {}]   ;;  %s393_s2 = inlined_call_operand.vmem [shape: f32[1,128], index: 2, kind: input, shape index: {}]   ;;  %s394_s3 = inlined_call_operand.vmem [shape: f32[8,128], index: 3, kind: output, shape index: {}]  }
   0x1   :  { %v277_v0 = vld [vmem:[%s391_s1 + $0x8] sm:$0xf]  ;;  %v276_v1 = vld [vmem:[%s392_s0 + $0x10] sm:$0xff]  ;;  %v293_v2 = vld [vmem:[%s391_s1 + $0x18] sm:$0xf] }
   0x2   :  { %278 = vmatpush.msk.msra.mxu2 %vm24_vm0, %v277_v0  ;;  %v271_v3 = vld [vmem:[%s391_s1 + $0x4] sm:$0xf]  ;;  %v15_v4 = vld [vmem:[%s391_s1] sm:$0xf]  ;;  %v281_v5 = vld [vmem:[%s391_s1 + $0xc] sm:$0xf] }
   0x3   :  { %279 = vmatmul.msk.f32.vlgmr.msra.gmra.mxu2 %vm20_vm1, %v276_v1  ;;  %272 = vmatpush.msk.msra.mxu0 %vm24_vm0, %v271_v3  ;;  %v270_v6 = vld [vmem:[%s392_s0 + $0x8] sm:$0xff]  ;;  %v14_v7 = vld [vmem:[%s392_s0] sm:$0xff]  ;;  %v280_v8 = vld [vmem:[%s392_s0 + $0x18] sm:$0xff] }
   0x4   :  { %294 = vmatpush.msk.msrb.mxu2 %vm24_vm0, %v293_v2  ;;  %274 = vmatpush.msk.msra.mxu1 %vm24_vm0, %v15_v4  ;;  %v285_v9 = vld [vmem:[%s391_s1 + $0x10] sm:$0xf]  ;;  %v297_v10 = vld [vmem:[%s391_s1 + $0x1c] sm:$0xf]  ;;  %v289_v11 = vld [vmem:[%s391_s1 + $0x14] sm:$0xf] }
   0x5   :  { %282 = vmatpush.msk.msra.mxu3 %vm24_vm0, %v281_v5  ;;  %273 = vmatmul.msk.f32.vlgmr.msra.gmra.mxu0 %vm20_vm1, %v270_v6  ;;  %v292_v12 = vld [vmem:[%s392_s0 + $0x30] sm:$0xff]  ;;  %v284_v13 = vld [vmem:[%s392_s0 + $0x20] sm:$0xff]  ;;  %v296_v14 = vld [vmem:[%s392_s0 + $0x38] sm:$0xff] }
   0x6   :  { %275 = vmatmul.msk.f32.vlgmr.msra.gmra.mxu1 %vm20_vm1, %v14_v7  ;;  %283 = vmatmul.msk.f32.vlgmr.msra.gmra.mxu3 %vm20_vm1, %v280_v8  ;;  %v288_v15 = vld [vmem:[%s392_s0 + $0x28] sm:$0xff]  ;;  %v300_v29 = vld [vmem:[%s393_s2] ss:$0 sm:$0xff] }
   0x7   :  { %286 = vmatpush.msk.msrb.mxu0 %vm24_vm0, %v285_v9  ;;  %298 = vmatpush.msk.msrb.mxu3 %vm24_vm0, %v297_v10 }
   0x8   :  { %290 = vmatpush.msk.msrb.mxu1 %vm24_vm0, %v289_v11 }
   0xb   :  { %295 = vmatmul.msk.f32.vlgmr.msrb.gmra.mxu2 %vm20_vm1, %v292_v12 }
   0xd   :  { %287 = vmatmul.msk.f32.vlgmr.msrb.gmra.mxu0 %vm20_vm1, %v284_v13 }
   0xe   :  { %299 = vmatmul.msk.f32.vlgmr.msrb.gmra.mxu3 %vm20_vm1, %v296_v14  ;;  %291 = vmatmul.msk.f32.vlgmr.msrb.gmra.mxu1 %vm20_vm1, %v288_v15 }
  0x82   :  { %v45_v16 = vpop.f32.mrf.mxu0 }
  0x83   :  { %v71_v17 = vpop.f32.mrf.mxu1 }
  0x84   :  { %v72_v18 = vadd.f32 %v71_v17, %v45_v16 }
  0x86   :  { %v101_v19 = vpop.f32.mrf.mxu2 }
  0x87   :  { %v104_v20 = vadd.f32 %v101_v19, %v72_v18 }
  0x89   :  { %v132_v21 = vpop.f32.mrf.mxu3 }
  0x8a   :  { %v135_v22 = vadd.f32 %v132_v21, %v104_v20  ;;  %v163_v23 = vpop.f32.mrf.mxu0 }
  0x8b   :  { %v194_v24 = vpop.f32.mrf.mxu1 }
  0x8c   :  { %v166_v25 = vadd.f32 %v163_v23, %v135_v22 }
  0x8e   :  { %v197_v26 = vadd.f32 %v194_v24, %v166_v25  ;;  %v225_v27 = vpop.f32.mrf.mxu2 }
  0x90   :  { %v228_v28 = vadd.f32 %v225_v27, %v197_v26 }
  0x91   :  { %v256_v30 = vpop.f32.mrf.mxu3 }
  0x92   :  { %v259_v31 = vadd.f32 %v256_v30, %v228_v28 }
  0x94   :  { %v264_v32 = vadd.f32 %v300_v29, %v259_v31 }
  0x96   :  { %265 = vst [vmem:[%s394_s3] sm:$0xff] %v264_v32 }

</bundles_post_ra>
